<compile_context>
chip_gen: v7x
topology: tpu7x:2x2x1
jax: 0.10.0
libtpu: 0.0.40
codegen_flags: <defaults>
</compile_context>

<pallas_src>
import numpy as np
import jax
import jax.numpy as jnp
from jax.experimental import pallas as pl
from jax.experimental.pallas import tpu as pltpu

EPS = 1e-9


def _round_up(v, m):
    return ((v + m - 1) // m) * m


def _make_ccc_kernel(n_valid, n_tile):
    """Build the kernel with the true sample count baked in (for tail masking)."""

    def kernel(x_ref, y_ref, bins_ref, ccc_ref, rho_ref,
               sx_ref, sy_ref, sxx_ref, syy_ref, sxy_ref):
        i = pl.program_id(0)

        @pl.when(i == 0)
        def _init():
            sx_ref[...] = jnp.zeros_like(sx_ref)
            sy_ref[...] = jnp.zeros_like(sy_ref)
            sxx_ref[...] = jnp.zeros_like(sxx_ref)
            syy_ref[...] = jnp.zeros_like(syy_ref)
            sxy_ref[...] = jnp.zeros_like(sxy_ref)

        # Lane-dense: samples on lanes, digitize bins on sublanes.
        x = x_ref[...].astype(jnp.float32)       # (D, n_tile) logits
        y = y_ref[...].astype(jnp.float32)       # (1, n_tile) targets
        b = bins_ref[...].astype(jnp.float32)    # (D, 1) bin centers

        # Fused softmax + expectation over bins (softmax never materialized).
        m = jnp.max(x, axis=0, keepdims=True)            # (1, n_tile)
        ex = jnp.exp(x - m)                              # (D, n_tile)
        den = jnp.sum(ex, axis=0, keepdims=True)         # (1, n_tile)
        num = jnp.sum(ex * b, axis=0, keepdims=True)     # (1, n_tile)
        xv = num / den                                   # (1, n_tile) = E[bins]

        # Mask lanes past the true sample count (N is static).
        lane = jax.lax.broadcasted_iota(jnp.int32, (1, n_tile), 1)
        valid = (i * n_tile + lane) < n_valid
        xv = jnp.where(valid, xv, 0.0)
        yv = jnp.where(valid, y, 0.0)

        # Per-lane sufficient statistics; reduced to scalars only at the end.
        sx_ref[...] += xv
        sy_ref[...] += yv
        sxx_ref[...] += xv * xv
        syy_ref[...] += yv * yv
        sxy_ref[...] += xv * yv

        @pl.when(i == pl.num_programs(0) - 1)
        def _finalize():
            n = jnp.float32(n_valid)
            s_x = jnp.sum(sx_ref[...])
            s_y = jnp.sum(sy_ref[...])
            s_xx = jnp.sum(sxx_ref[...])
            s_yy = jnp.sum(syy_ref[...])
            s_xy = jnp.sum(sxy_ref[...])

            x_mean = s_x / n
            y_mean = s_y / n
            c_xx = jnp.maximum(s_xx - n * x_mean * x_mean, 0.0)  # sum (x - mx)^2
            c_yy = jnp.maximum(s_yy - n * y_mean * y_mean, 0.0)  # sum (y - my)^2
            c_xy = s_xy - n * x_mean * y_mean                    # sum (x-mx)(y-my)

            # Reference: vx = x - mean(x) + eps, vy = y - mean(y)
            #   sum(vx*vy) == c_xy (eps * sum(vy) vanishes),
            #   sum(vx*vx) == c_xx + n*eps^2.
            rho = c_xy / (jnp.sqrt(c_xx + n * (EPS * EPS)) * jnp.sqrt(c_yy))

            x_m = x_mean + EPS
            y_m = y_mean
            x_s = jnp.sqrt(c_xx / (n - 1.0)) + EPS   # torch.std -> unbiased (N-1)
            y_s = jnp.sqrt(c_yy / (n - 1.0))

            ccc = (2.0 * rho * x_s * y_s
                   / (x_s * x_s + y_s * y_s + (x_m - y_m) * (x_m - y_m)))

            ccc_ref[0, 0] = ccc
            rho_ref[0, 0] = rho

    return kernel


def ccc_loss(x, y, bins, *, n_tile=4096):
    """x: (N, D) logits (native dtype), y: (N,) targets, bins: (1, D) f32.

    Returns (ccc, rho) scalars, matching CCCLoss.forward semantics.
    """
    N, D = x.shape
    y = y.reshape(-1)

    # Tile size: multiple of 128 lanes, no larger than needed.
    n_tile = max(128, (int(n_tile) // 128) * 128)
    n_tile = min(n_tile, _round_up(N, 128))
    n_pad = _round_up(N, n_tile)
    num_tiles = n_pad // n_tile

    # Lane-dense layout plumbing (no dtype up-cast here; kernel casts to f32).
    xt = jnp.pad(jnp.transpose(x), ((0, 0), (0, n_pad - N)))    # (D, n_pad)
    yr = jnp.pad(y.reshape(1, N), ((0, 0), (0, n_pad - N)))     # (1, n_pad)
    bc = bins.reshape(D, 1)                                     # (D, 1)

    ccc, rho = pl.pallas_call(
        _make_ccc_kernel(N, n_tile),
        grid_spec=pltpu.PrefetchScalarGridSpec(
            num_scalar_prefetch=0,
            grid=(num_tiles,),
            in_specs=[
                pl.BlockSpec((D, n_tile), lambda i: (0, i)),
                pl.BlockSpec((1, n_tile), lambda i: (0, i)),
                pl.BlockSpec((D, 1), lambda i: (0, 0)),
            ],
            out_specs=(
                pl.BlockSpec((1, 1), lambda i: (0, 0), memory_space=pltpu.SMEM),
                pl.BlockSpec((1, 1), lambda i: (0, 0), memory_space=pltpu.SMEM),
            ),
            scratch_shapes=[pltpu.VMEM((1, n_tile), jnp.float32)] * 5,
        ),
        out_shape=(
            jax.ShapeDtypeStruct((1, 1), jnp.float32),
            jax.ShapeDtypeStruct((1, 1), jnp.float32),
        ),
        compiler_params=pltpu.CompilerParams(
            dimension_semantics=("arbitrary",),        # reduction over N tiles
            vmem_limit_bytes=32 * 1024 * 1024,
        ),
    )(xt, yr, bc)

    return ccc[0, 0], rho[0, 0]


if __name__ == "__main__":
    # CCCLoss(digitize_num=16, range=[-1, 1])
    digitize_num = 16
    value_range = (-1.0, 1.0)
    N = 300  # with n_tile=128 this exercises 3 grid tiles + a masked tail

    bins = jnp.asarray(
        np.linspace(value_range[0], value_range[1], num=digitize_num),
        dtype=jnp.float32,
    ).reshape(1, -1)

    key = jax.random.PRNGKey(0)
    kx, ky = jax.random.split(key)
    x = jax.random.normal(kx, (N, digitize_num), dtype=jnp.float32)   # logits
    y = jax.random.uniform(ky, (N,), dtype=jnp.float32,
                           minval=-1.0, maxval=1.0)                   # targets

    ccc, rho = ccc_loss(x, y, bins, n_tile=128)
    jax.block_until_ready((ccc, rho))

    # Pure-JAX reference mirroring the PyTorch forward.
    sm = jax.nn.softmax(x.astype(jnp.float32), axis=-1)
    xv = jnp.sum(sm * bins, axis=-1)
    yv = y.astype(jnp.float32)
    vx = xv - jnp.mean(xv) + EPS
    vy = yv - jnp.mean(yv)
    rho_r = jnp.sum(vx * vy) / (jnp.sqrt(jnp.sum(vx * vx)) * jnp.sqrt(jnp.sum(vy * vy)))
    x_m = jnp.mean(xv) + EPS
    y_m = jnp.mean(yv)
    x_s = jnp.std(xv, ddof=1) + EPS
    y_s = jnp.std(yv, ddof=1)
    ccc_r = 2 * rho_r * x_s * y_s / (x_s ** 2 + y_s ** 2 + (x_m - y_m) ** 2)

    np.testing.assert_allclose(float(rho), float(rho_r), rtol=5e-3, atol=5e-3)
    np.testing.assert_allclose(float(ccc), float(ccc_r), rtol=5e-3, atol=5e-3)
    print("KERNEL_OK")
</pallas_src>

<mosaic_0001>
module attributes {stable_mosaic.version = 11 : i64} {
  func.func @kernel(%arg0: i32, %arg1: memref<16x128xf32, #tpu.memory_space<vmem>>, %arg2: memref<1x128xf32, #tpu.memory_space<vmem>>, %arg3: memref<16x1xf32, #tpu.memory_space<vmem>>, %arg4: memref<1x1xf32, #tpu.memory_space<smem>>, %arg5: memref<1x1xf32, #tpu.memory_space<smem>>, %arg6: memref<1x128xf32, #tpu.memory_space<vmem>>, %arg7: memref<1x128xf32, #tpu.memory_space<vmem>>, %arg8: memref<1x128xf32, #tpu.memory_space<vmem>>, %arg9: memref<1x128xf32, #tpu.memory_space<vmem>>, %arg10: memref<1x128xf32, #tpu.memory_space<vmem>>) attributes {dimension_semantics = [#tpu.dimension_semantics<arbitrary>], iteration_bounds = array<i64: 3>, scalar_prefetch = 0 : i64, scratch_operands = 5 : i64, tpu.core_type = #tpu.core_type<tc>, window_params = [{transform_indices = @transform_0, window_bounds = array<i64: 16, 128>}, {transform_indices = @transform_1, window_bounds = array<i64: 1, 128>}, {pipeline_mode = #tpu.pipeline_mode<synchronous>, transform_indices = @transform_2, window_bounds = array<i64: 16, 1>}, {transform_indices = @transform_3, window_bounds = array<i64: 1, 1>}, {transform_indices = @transform_4, window_bounds = array<i64: 1, 1>}]} {
    %c0_i32 = arith.constant 0 : i32
    %0 = arith.cmpi eq, %arg0, %c0_i32 : i32
    %1 = arith.extui %0 : i1 to i32
    %c0_i32_0 = arith.constant 0 : i32
    %2 = arith.cmpi ne, %1, %c0_i32_0 : i32
    scf.if %2 {
      %cst_31 = arith.constant 0.000000e+00 : f32
      %49 = vector.broadcast %cst_31 : f32 to vector<1x128xf32>
      %c0_32 = arith.constant 0 : index
      %c0_33 = arith.constant 0 : index
      %50 = vector.load %arg6[%c0_32, %c0_33] : memref<1x128xf32, #tpu.memory_space<vmem>>, vector<1x128xf32>
      tpu.vector_store %arg6[%c0_32, %c0_33], %49 {strides = array<i32>} : memref<1x128xf32, #tpu.memory_space<vmem>>, vector<1x128xf32>,
      %cst_34 = arith.constant 0.000000e+00 : f32
      %51 = vector.broadcast %cst_34 : f32 to vector<1x128xf32>
      %c0_35 = arith.constant 0 : index
      %c0_36 = arith.constant 0 : index
      %52 = vector.load %arg7[%c0_35, %c0_36] : memref<1x128xf32, #tpu.memory_space<vmem>>, vector<1x128xf32>
      tpu.vector_store %arg7[%c0_35, %c0_36], %51 {strides = array<i32>} : memref<1x128xf32, #tpu.memory_space<vmem>>, vector<1x128xf32>,
      %cst_37 = arith.constant 0.000000e+00 : f32
      %53 = vector.broadcast %cst_37 : f32 to vector<1x128xf32>
      %c0_38 = arith.constant 0 : index
      %c0_39 = arith.constant 0 : index
      %54 = vector.load %arg8[%c0_38, %c0_39] : memref<1x128xf32, #tpu.memory_space<vmem>>, vector<1x128xf32>
      tpu.vector_store %arg8[%c0_38, %c0_39], %53 {strides = array<i32>} : memref<1x128xf32, #tpu.memory_space<vmem>>, vector<1x128xf32>,
      %cst_40 = arith.constant 0.000000e+00 : f32
      %55 = vector.broadcast %cst_40 : f32 to vector<1x128xf32>
      %c0_41 = arith.constant 0 : index
      %c0_42 = arith.constant 0 : index
      %56 = vector.load %arg9[%c0_41, %c0_42] : memref<1x128xf32, #tpu.memory_space<vmem>>, vector<1x128xf32>
      tpu.vector_store %arg9[%c0_41, %c0_42], %55 {strides = array<i32>} : memref<1x128xf32, #tpu.memory_space<vmem>>, vector<1x128xf32>,
      %cst_43 = arith.constant 0.000000e+00 : f32
      %57 = vector.broadcast %cst_43 : f32 to vector<1x128xf32>
      %c0_44 = arith.constant 0 : index
      %c0_45 = arith.constant 0 : index
      %58 = vector.load %arg10[%c0_44, %c0_45] : memref<1x128xf32, #tpu.memory_space<vmem>>, vector<1x128xf32>
      tpu.vector_store %arg10[%c0_44, %c0_45], %57 {strides = array<i32>} : memref<1x128xf32, #tpu.memory_space<vmem>>, vector<1x128xf32>,
    } else {
    }
    %c0 = arith.constant 0 : index
    %c0_1 = arith.constant 0 : index
    %3 = vector.load %arg1[%c0, %c0_1] : memref<16x128xf32, #tpu.memory_space<vmem>>, vector<16x128xf32>
    %c0_2 = arith.constant 0 : index
    %c0_3 = arith.constant 0 : index
    %4 = vector.load %arg2[%c0_2, %c0_3] : memref<1x128xf32, #tpu.memory_space<vmem>>, vector<1x128xf32>
    %c0_4 = arith.constant 0 : index
    %c0_5 = arith.constant 0 : index
    %5 = vector.load %arg3[%c0_4, %c0_5] : memref<16x1xf32, #tpu.memory_space<vmem>>, vector<16x1xf32>
    %cst = arith.constant dense<0xFF800000> : vector<128xf32>
    %6 = vector.multi_reduction <maximumf>, %3, %cst [0] : vector<16x128xf32> to vector<128xf32>
    %7 = vector.shape_cast %6 : vector<128xf32> to vector<1x128xf32>
    %8 = vector.broadcast %7 : vector<1x128xf32> to vector<16x128xf32>
    %9 = arith.subf %3, %8 : vector<16x128xf32>
    %10 = math.exp %9 : vector<16x128xf32>
    %cst_6 = arith.constant dense<0.000000e+00> : vector<128xf32>
    %11 = vector.multi_reduction <add>, %10, %cst_6 [0] : vector<16x128xf32> to vector<128xf32>
    %12 = vector.shape_cast %11 : vector<128xf32> to vector<1x128xf32>
    %13 = vector.broadcast %5 : vector<16x1xf32> to vector<16x128xf32>
    %14 = arith.mulf %10, %13 : vector<16x128xf32>
    %cst_7 = arith.constant dense<0.000000e+00> : vector<128xf32>
    %15 = vector.multi_reduction <add>, %14, %cst_7 [0] : vector<16x128xf32> to vector<128xf32>
    %16 = vector.shape_cast %15 : vector<128xf32> to vector<1x128xf32>
    %17 = arith.divf %16, %12 : vector<1x128xf32>
    %18 = tpu.iota {dimensions = array<i32: 1>} : vector<1x128xi32>
    %c128_i32 = arith.constant 128 : i32
    %19 = arith.muli %arg0, %c128_i32 : i32
    %20 = vector.broadcast %19 : i32 to vector<1x128xi32>
    %21 = arith.addi %20, %18 : vector<1x128xi32>
    %c300_i32 = arith.constant 300 : i32
    %22 = vector.broadcast %c300_i32 : i32 to vector<1x128xi32>
    %23 = arith.cmpi slt, %21, %22 : vector<1x128xi32>
    %cst_8 = arith.constant 0.000000e+00 : f32
    %24 = vector.broadcast %cst_8 : f32 to vector<1x128xf32>
    %25 = arith.select %23, %17, %24 : vector<1x128xi1>, vector<1x128xf32>
    %cst_9 = arith.constant 0.000000e+00 : f32
    %26 = vector.broadcast %cst_9 : f32 to vector<1x128xf32>
    %27 = arith.select %23, %4, %26 : vector<1x128xi1>, vector<1x128xf32>
    %c0_10 = arith.constant 0 : index
    %c0_11 = arith.constant 0 : index
    %28 = vector.load %arg6[%c0_10, %c0_11] : memref<1x128xf32, #tpu.memory_space<vmem>>, vector<1x128xf32>
    %29 = arith.addf %28, %25 : vector<1x128xf32>
    %c0_12 = arith.constant 0 : index
    %c0_13 = arith.constant 0 : index
    %30 = vector.load %arg6[%c0_12, %c0_13] : memref<1x128xf32, #tpu.memory_space<vmem>>, vector<1x128xf32>
    tpu.vector_store %arg6[%c0_12, %c0_13], %29 {strides = array<i32>} : memref<1x128xf32, #tpu.memory_space<vmem>>, vector<1x128xf32>,
    %c0_14 = arith.constant 0 : index
    %c0_15 = arith.constant 0 : index
    %31 = vector.load %arg7[%c0_14, %c0_15] : memref<1x128xf32, #tpu.memory_space<vmem>>, vector<1x128xf32>
    %32 = arith.addf %31, %27 : vector<1x128xf32>
    %c0_16 = arith.constant 0 : index
    %c0_17 = arith.constant 0 : index
    %33 = vector.load %arg7[%c0_16, %c0_17] : memref<1x128xf32, #tpu.memory_space<vmem>>, vector<1x128xf32>
    tpu.vector_store %arg7[%c0_16, %c0_17], %32 {strides = array<i32>} : memref<1x128xf32, #tpu.memory_space<vmem>>, vector<1x128xf32>,
    %c0_18 = arith.constant 0 : index
    %c0_19 = arith.constant 0 : index
    %34 = vector.load %arg8[%c0_18, %c0_19] : memref<1x128xf32, #tpu.memory_space<vmem>>, vector<1x128xf32>
    %35 = arith.mulf %25, %25 : vector<1x128xf32>
    %36 = arith.addf %34, %35 : vector<1x128xf32>
    %c0_20 = arith.constant 0 : index
    %c0_21 = arith.constant 0 : index
    %37 = vector.load %arg8[%c0_20, %c0_21] : memref<1x128xf32, #tpu.memory_space<vmem>>, vector<1x128xf32>
    tpu.vector_store %arg8[%c0_20, %c0_21], %36 {strides = array<i32>} : memref<1x128xf32, #tpu.memory_space<vmem>>, vector<1x128xf32>,
    %c0_22 = arith.constant 0 : index
    %c0_23 = arith.constant 0 : index
    %38 = vector.load %arg9[%c0_22, %c0_23] : memref<1x128xf32, #tpu.memory_space<vmem>>, vector<1x128xf32>
    %39 = arith.mulf %27, %27 : vector<1x128xf32>
    %40 = arith.addf %38, %39 : vector<1x128xf32>
    %c0_24 = arith.constant 0 : index
    %c0_25 = arith.constant 0 : index
    %41 = vector.load %arg9[%c0_24, %c0_25] : memref<1x128xf32, #tpu.memory_space<vmem>>, vector<1x128xf32>
    tpu.vector_store %arg9[%c0_24, %c0_25], %40 {strides = array<i32>} : memref<1x128xf32, #tpu.memory_space<vmem>>, vector<1x128xf32>,
    %c0_26 = arith.constant 0 : index
    %c0_27 = arith.constant 0 : index
    %42 = vector.load %arg10[%c0_26, %c0_27] : memref<1x128xf32, #tpu.memory_space<vmem>>, vector<1x128xf32>
    %43 = arith.mulf %25, %27 : vector<1x128xf32>
    %44 = arith.addf %42, %43 : vector<1x128xf32>
    %c0_28 = arith.constant 0 : index
    %c0_29 = arith.constant 0 : index
    %45 = vector.load %arg10[%c0_28, %c0_29] : memref<1x128xf32, #tpu.memory_space<vmem>>, vector<1x128xf32>
    tpu.vector_store %arg10[%c0_28, %c0_29], %44 {strides = array<i32>} : memref<1x128xf32, #tpu.memory_space<vmem>>, vector<1x128xf32>,
    %c2_i32 = arith.constant 2 : i32
    %46 = arith.cmpi eq, %arg0, %c2_i32 : i32
    %47 = arith.extui %46 : i1 to i32
    %c0_i32_30 = arith.constant 0 : i32
    %48 = arith.cmpi ne, %47, %c0_i32_30 : i32
    scf.if %48 {
      %c0_31 = arith.constant 0 : index
      %c0_32 = arith.constant 0 : index
      %49 = vector.load %arg6[%c0_31, %c0_32] : memref<1x128xf32, #tpu.memory_space<vmem>>, vector<1x128xf32>
      %50 = vector.shape_cast %49 : vector<1x128xf32> to vector<1x1x128xf32>
      %cst_33 = arith.constant dense<0.000000e+00> : vector<1xf32>
      %51 = vector.multi_reduction <add>, %50, %cst_33 [1, 2] : vector<1x1x128xf32> to vector<1xf32>
      %52 = vector.shape_cast %51 : vector<1xf32> to vector<1x1x1xf32>
      %53 = vector.extract %52[0, 0, 0] : f32 from vector<1x1x1xf32>
      %c0_34 = arith.constant 0 : index
      %c0_35 = arith.constant 0 : index
      %54 = vector.load %arg7[%c0_34, %c0_35] : memref<1x128xf32, #tpu.memory_space<vmem>>, vector<1x128xf32>
      %55 = vector.shape_cast %54 : vector<1x128xf32> to vector<1x1x128xf32>
      %cst_36 = arith.constant dense<0.000000e+00> : vector<1xf32>
      %56 = vector.multi_reduction <add>, %55, %cst_36 [1, 2] : vector<1x1x128xf32> to vector<1xf32>
      %57 = vector.shape_cast %56 : vector<1xf32> to vector<1x1x1xf32>
      %58 = vector.extract %57[0, 0, 0] : f32 from vector<1x1x1xf32>
      %c0_37 = arith.constant 0 : index
      %c0_38 = arith.constant 0 : index
      %59 = vector.load %arg8[%c0_37, %c0_38] : memref<1x128xf32, #tpu.memory_space<vmem>>, vector<1x128xf32>
      %60 = vector.shape_cast %59 : vector<1x128xf32> to vector<1x1x128xf32>
      %cst_39 = arith.constant dense<0.000000e+00> : vector<1xf32>
      %61 = vector.multi_reduction <add>, %60, %cst_39 [1, 2] : vector<1x1x128xf32> to vector<1xf32>
      %62 = vector.shape_cast %61 : vector<1xf32> to vector<1x1x1xf32>
      %63 = vector.extract %62[0, 0, 0] : f32 from vector<1x1x1xf32>
      %c0_40 = arith.constant 0 : index
      %c0_41 = arith.constant 0 : index
      %64 = vector.load %arg9[%c0_40, %c0_41] : memref<1x128xf32, #tpu.memory_space<vmem>>, vector<1x128xf32>
      %65 = vector.shape_cast %64 : vector<1x128xf32> to vector<1x1x128xf32>
      %cst_42 = arith.constant dense<0.000000e+00> : vector<1xf32>
      %66 = vector.multi_reduction <add>, %65, %cst_42 [1, 2] : vector<1x1x128xf32> to vector<1xf32>
      %67 = vector.shape_cast %66 : vector<1xf32> to vector<1x1x1xf32>
      %68 = vector.extract %67[0, 0, 0] : f32 from vector<1x1x1xf32>
      %c0_43 = arith.constant 0 : index
      %c0_44 = arith.constant 0 : index
      %69 = vector.load %arg10[%c0_43, %c0_44] : memref<1x128xf32, #tpu.memory_space<vmem>>, vector<1x128xf32>
      %70 = vector.shape_cast %69 : vector<1x128xf32> to vector<1x1x128xf32>
      %cst_45 = arith.constant dense<0.000000e+00> : vector<1xf32>
      %71 = vector.multi_reduction <add>, %70, %cst_45 [1, 2] : vector<1x1x128xf32> to vector<1xf32>
      %72 = vector.shape_cast %71 : vector<1xf32> to vector<1x1x1xf32>
      %73 = vector.extract %72[0, 0, 0] : f32 from vector<1x1x1xf32>
      %cst_46 = arith.constant 3.000000e+02 : f32
      %74 = arith.divf %53, %cst_46 : f32
      %cst_47 = arith.constant 3.000000e+02 : f32
      %75 = arith.divf %58, %cst_47 : f32
      %cst_48 = arith.constant 3.000000e+02 : f32
      %76 = arith.mulf %cst_48, %74 : f32
      %77 = arith.mulf %76, %74 : f32
      %78 = arith.subf %63, %77 : f32
      %cst_49 = arith.constant 0.000000e+00 : f32
      %79 = arith.maximumf %78, %cst_49 : f32
      %cst_50 = arith.constant 3.000000e+02 : f32
      %80 = arith.mulf %cst_50, %75 : f32
      %81 = arith.mulf %80, %75 : f32
      %82 = arith.subf %68, %81 : f32
      %cst_51 = arith.constant 0.000000e+00 : f32
      %83 = arith.maximumf %82, %cst_51 : f32
      %cst_52 = arith.constant 3.000000e+02 : f32
      %84 = arith.mulf %cst_52, %74 : f32
      %85 = arith.mulf %84, %75 : f32
      %86 = arith.subf %73, %85 : f32
      %cst_53 = arith.constant 3.000000e+02 : f32
      %cst_54 = arith.constant 1.000000e-18 : f32
      %87 = arith.mulf %cst_53, %cst_54 : f32
      %88 = arith.addf %79, %87 : f32
      %89 = math.sqrt %88 : f32
      %90 = math.sqrt %83 : f32
      %91 = arith.mulf %89, %90 : f32
      %92 = arith.divf %86, %91 : f32
      %cst_55 = arith.constant 9.99999971E-10 : f32
      %93 = arith.addf %74, %cst_55 : f32
      %cst_56 = arith.constant 3.000000e+02 : f32
      %cst_57 = arith.constant 1.000000e+00 : f32
      %94 = arith.subf %cst_56, %cst_57 : f32
      %95 = arith.divf %79, %94 : f32
      %96 = math.sqrt %95 : f32
      %cst_58 = arith.constant 9.99999971E-10 : f32
      %97 = arith.addf %96, %cst_58 : f32
      %cst_59 = arith.constant 3.000000e+02 : f32
      %cst_60 = arith.constant 1.000000e+00 : f32
      %98 = arith.subf %cst_59, %cst_60 : f32
      %99 = arith.divf %83, %98 : f32
      %100 = math.sqrt %99 : f32
      %cst_61 = arith.constant 2.000000e+00 : f32
      %101 = arith.mulf %cst_61, %92 : f32
      %102 = arith.mulf %101, %97 : f32
      %103 = arith.mulf %102, %100 : f32
      %104 = arith.mulf %97, %97 : f32
      %105 = arith.mulf %100, %100 : f32
      %106 = arith.addf %104, %105 : f32
      %107 = arith.subf %93, %75 : f32
      %108 = arith.subf %93, %75 : f32
      %109 = arith.mulf %107, %108 : f32
      %110 = arith.addf %106, %109 : f32
      %111 = arith.divf %103, %110 : f32
      %c0_62 = arith.constant 0 : index
      %c0_63 = arith.constant 0 : index
      %112 = memref.load %arg4[%c0_62, %c0_63] : memref<1x1xf32, #tpu.memory_space<smem>>
      memref.store %111, %arg4[%c0_62, %c0_63] : memref<1x1xf32, #tpu.memory_space<smem>>
      %c0_64 = arith.constant 0 : index
      %c0_65 = arith.constant 0 : index
      %113 = memref.load %arg5[%c0_64, %c0_65] : memref<1x1xf32, #tpu.memory_space<smem>>
      memref.store %92, %arg5[%c0_64, %c0_65] : memref<1x1xf32, #tpu.memory_space<smem>>
    } else {
    }
    return
  }
  func.func @transform_0(%arg0: i32) -> (i32, i32) {
    %c0_i32 = arith.constant 0 : i32
    %c0_i32_0 = arith.constant 0 : i32
    return %c0_i32, %arg0 : i32, i32
  }
  func.func @transform_1(%arg0: i32) -> (i32, i32) {
    %c0_i32 = arith.constant 0 : i32
    %c0_i32_0 = arith.constant 0 : i32
    return %c0_i32, %arg0 : i32, i32
  }
  func.func @transform_2(%arg0: i32) -> (i32, i32) {
    %c0_i32 = arith.constant 0 : i32
    %c0_i32_0 = arith.constant 0 : i32
    %c0_i32_1 = arith.constant 0 : i32
    return %c0_i32, %c0_i32_0 : i32, i32
  }
  func.func @transform_3(%arg0: i32) -> (i32, i32) {
    %c0_i32 = arith.constant 0 : i32
    %c0_i32_0 = arith.constant 0 : i32
    %c0_i32_1 = arith.constant 0 : i32
    return %c0_i32, %c0_i32_0 : i32, i32
  }
  func.func @transform_4(%arg0: i32) -> (i32, i32) {
    %c0_i32 = arith.constant 0 : i32
    %c0_i32_0 = arith.constant 0 : i32
    %c0_i32_1 = arith.constant 0 : i32
    return %c0_i32, %c0_i32_0 : i32, i32
  }
}

</mosaic_0001>

<bundles_post_ra>
// kernel: tpu_custom_call.1
= control target key start
LH: loop header
LB: loop body
LE: loop exit
PB: predicated region body
PF: predicated region fallthrough
CT: control target
= control target key end

     0   :  { %10 = vsyncpa [#allocation8], 0  ;;  %s945_s0 = inlined_call_operand.hbm [shape: f32[16,384], index: 0, kind: input, shape index: {}]   ;;  %s946_s1 = inlined_call_operand.vmem [shape: f32[1,384], index: 1, kind: input, shape index: {}]   ;;  %s947_s2 = inlined_call_operand.vmem [shape: f32[16,1], index: 2, kind: input, shape index: {}]   ;;  %s948_s3 = inlined_call_operand.hbm [shape: f32[1,1], index: 3, kind: output, shape index: {0}]   ;;  %s949_s4 = inlined_call_operand.hbm [shape: f32[1,1], index: 4, kind: output, shape index: {1}]  }
   0x1   :  { %12 = vsyncpa [#allocation8 + $0x1], 0 }
   0x2   :  { %13 = vsyncpa [#allocation9], 0 }
   0x3   :  { %14 = vsyncpa [#allocation12], 0  ;;  %s773_s15 = smov 0   ;;  %s775_s16 = smov 0  }
   0x4   :  { %s777_s17 = smov 0   ;;  %s779_s18 = smov 0  }
   0x5 LB: > { %s792_s19 = sadd.s32 4294967295, %s737_s18   ;;  %s795_s20 = sadd.s32 1, %s737_s18   ;;  %s737_s18 = sphi %s779_s18, %s955_s18   ;;  %s733_s17 = sphi %s777_s17, %s954_s17   ;;  %s729_s16 = sphi %s775_s16, %s953_s16   ;;  %s725_s15 = sphi %s773_s15, %s952_s15  }
   0x6   : > { %s24_s21 = ssub.s32 %s737_s18, %s795_s20  ;;  %s27_s22 = sadd.s32 1, %s733_s17 }
   0x7   : > { %p25_p0 = scmp.eq.s32.totalorder %s24_s21, 0  ;;  %p34_p1 = scmp.ne.s32.totalorder %s733_s17, %s729_s16 }
   0x8   : > { %p35_p2 = scmp.eq.s32.totalorder %s737_s18, 0  ;;  %p40_p3 = scmp.ne.s32.totalorder %s729_s16, %s725_s15 }
   0x9   : > { %s805_s23 = scalar_select %p25_p0, %s733_s17, %s27_s22  }
   0xa   : > { %p36_p4 = por %p35_p2, %p34_p1  ;;  %p41_p5 = scmp.eq.s32.totalorder %s792_s19, 0 }
   0xb   : > { %p577_p6 = scmp.lt.s32.totalorder %s737_s18, 3  ;;  %s156_s25 = sand.u32 1, %s733_s17  }
   0xc   : > { %p809_p7 = por %p41_p5, %p40_p3  ;;  %s528_s26 = sshll.u32 %s156_s25, 4 }
   0xd   : > { %s529_s27 = sshll.u32 %s737_s18, 7  ;;  %s160_s5 = scalar_lea.vmem [#allocation7], %s528_s26 }
   0xe   : > { %s818_s30 = scalar_lea.hbm %s945_s0, %s529_s27  ;;  %s166_s6 = sshll.u32 %s160_s5, 4  ;;  %s820_s6 = int_to_ptr.vmem [resolvable:$true] %s166_s6 }
   0xf   : > { %p822_p8 = pnand %p577_p6, %p36_p4  ;;  %s826_s8 = scalar_lea.sflag [#allocation8], %s156_s25 }
  0x10   : > { %s641_s9 = scalar_lea.hbm %s818_s30, 256  ;;  %s646_s12 = scalar_lea.hbm %s945_s0, 768 }
  0x11   : > { %p642_p9 = scmp.ne.s32.totalorder %s818_s30, %s641_s9  ;;  %p643_p10 = pneg %p822_p8 }
  0x12   : > { %p647_p13 = scmp.lt.u32.totalorder %s818_s30, %s945_s0  ;;  %p648_p0 = scmp.lt.u32.totalorder %s646_s12, %s641_s9 }
  0x13   : > { %p644_p11 = pnand %p643_p10, %p642_p9  ;;  %p650_p2 = scmp.lt.u32.totalorder %s641_s9, %s818_s30 }
  0x14   : > { %p649_p1 = por %p648_p0, %p647_p13 }
  0x15   : > { %p645_p12 = pneg %p644_p11 }
  0x16   : > { %p651_p3 = por %p650_p2, %p649_p1 }
  0x18   : > { %p652_p4 = pnand %p651_p3, %p645_p12 }
  0x1a   : > { %655 = shalt.err (!%p652_p4)
}
  0x1b   : > { %s656_s15 = scalar_lea.vmem %s820_s6, 256  ;;  %s739_s21 = smov [#allocation7]  }
  0x1c   : > { %p657_p5 = scmp.ne.s32.totalorder %s820_s6, %s656_s15  ;;  %s661_s22 = sshll.u32 %s739_s21, 4  ;;  %s662_s22 = int_to_ptr.vmem [resolvable:$false] %s661_s22 }
  0x1d   : > { %s663_s25 = scalar_lea.vmem %s662_s22, 512  ;;  %p664_p11 = scmp.lt.s32.totalorder %s820_s6, %s662_s22 }
  0x1e   : > { %p659_p6 = pnand %p657_p5, %p643_p10  ;;  %p665_p13 = scmp.lt.s32.totalorder %s663_s25, %s656_s15 }
  0x20   : > { %p660_p9 = pneg %p659_p6  ;;  %p666_p0 = por %p665_p13, %p664_p11 }
  0x22   : > { %p667_p1 = pnand %p666_p0, %p660_p9 }
  0x24   : > { %670 = shalt.err (!%p667_p1)
}
  0x25   : > { %s740_s26 = smov 384   ;;  %s741_s27 = smov 128  }
  0x26   : > { %s742_s28 = smov 8   ;;  %p530_p10 = scmp.ge.s32.totalorder %s737_s18, 1 }
  0x27   : > { %576 = dma.hbm_to_vmem [thread:$0]  (!%p822_p8), %s818_s30, 256, %s820_s6, %s826_s8, %s740_s26, %s741_s27, %s742_s28  }
  0x28   : > { %p180_p12 = scmp.lt.s32.totalorder %s737_s18, 4 }
  0x2a   : > { %p181_p2 = pnand %p530_p10, %p180_p12 }
  0x2b   : > { %s186_s29 = sand.u32 (!%p181_p2), 1, %s729_s16  }
  0x2c   : > { %184 = sbr.rel (%p181_p2) target bundleno = 678 (0x2a6), region = 32  ;;  %s857_s5 = sshll.u32 (!%p181_p2), %s186_s29, 4 }
  0x2d   : > { %s187_s9 = scalar_lea.sflag (!%p181_p2), [#allocation8], %s186_s29  ;;  %s190_s10 = scalar_lea.vmem (!%p181_p2), [#allocation7], %s857_s5 }
  0x33   : > { %712 = dma.done.wait (%p809_p7), %s187_s9, 256  }
  0x34   : > { %714 = vsyncadd (%p809_p7), %s187_s9, 4294967040  ;;  %p213_p8 = scmp.lt.s32.totalorder %s792_s19, 2  ;;  %p532_p3 = scmp.ne.s32.totalorder %s792_s19, 0 }
  0x35   : > { %v743_v0 = vmov (!%p532_p3), 0.0  }
  0x36   : > { %s214_s30 = scalar_select %p213_p8, %s792_s19, 2 }
  0x37   : > { %219 = sbr.rel (%p532_p3) target bundleno = 62 (0x3e), region = 40  ;;  %220 = vst [vmem:[#allocation2] sm:$0x1] (!%p532_p3), %v743_v0  ;;  %221 = vst [vmem:[#allocation3] sm:$0x1] (!%p532_p3), %v743_v0 }
  0x38   : > { %s215_s7 = scalar_lea.vmem %s946_s1, %s214_s30  ;;  %222 = vst [vmem:[#allocation4] sm:$0x1] (!%p532_p3), %v743_v0  ;;  %223 = vst [vmem:[#allocation5] sm:$0x1] (!%p532_p3), %v743_v0 }
  0x39   : > { %224 = vst [vmem:[#allocation6] sm:$0x1] (!%p532_p3), %v743_v0 }
  0x3e PF: > { %v228_v1 = vld [vmem:[%s947_s2] sm:$0xff]  ;;  %v744_v2 = vmov 0   ;;  %v229_v3 = vld [vmem:[%s947_s2 + $0x8] sm:$0xff]  ;;  %v271_v4 = vlaneseq  ;;  %s533_s13 = sshll.u32 %s792_s19, 7  ;;  %p534_p7 = scmp.ne.s32.totalorder %s792_s19, 2 }
  0x3f   : > { %622 = vset.pattern.permute.xlu0 %v744_v2  ;;  %v274_v6 = vstv %s533_s13  ;;  %v227_v8 = vld [vmem:[%s215_s7] sm:$0x1]  ;;  %v282_v9 = vld [vmem:[#allocation3] sm:$0x1]  ;;  %v289_v10 = vld [vmem:[#allocation5] sm:$0x1] }
  0x40   : > { %252 = vperm.xlu0 %622, %v228_v1   ;;  %v272_v5 = vand.u32 127, %v271_v4  ;;  %v225_v15 = vld [vmem:[%s190_s10] sm:$0xff]  ;;  %v226_v16 = vld [vmem:[%s190_s10 + $0x8] sm:$0xff]  ;;  %vm302_vm1 = vcmask (!%p534_p7), 1040384   ;;  %s745_s30 = smov (!%p534_p7), 0.0  }
  0x41   : > { %v230_v17 = vmax.f32 %v225_v15, %v226_v16  ;;  %v279_v49 = vld [vmem:[#allocation2] sm:$0x1]  ;;  %v285_v51 = vld [vmem:[#allocation4] sm:$0x1]  ;;  %v293_v52 = vld [vmem:[#allocation6] sm:$0x1] }
  0x42   : > { %v275_v7 = vadd.s32 %v274_v6, %v272_v5 }
  0x43   : > { %v231_v18 = vrot.slane %v230_v17, 4 }
  0x44   : > { %257 = vperm.xlu0 %622, %v229_v3   ;;  %vm276_vm0 = vcmp.lt.s32.totalorder %v275_v7, 300 }
  0x45   : > { %v278_v11 = vsel %vm276_vm0, %v227_v8, 0.0  ;;  %v232_v19 = vmax.f32 %v230_v17, %v231_v18 }
  0x46   : > { %v290_v12 = vmul.f32 %v278_v11, %v278_v11  ;;  %v283_v13 = vadd.f32 %v282_v9, %v278_v11 }
  0x47   : > { %v233_v20 = vrot.slane %v232_v19, 2 }
  0x48   : > { %v291_v14 = vadd.f32 %v290_v12, %v289_v10  ;;  %284 = vst [vmem:[#allocation3] sm:$0x1] %v283_v13 }
  0x49   : > { %v234_v21 = vmax.f32 %v232_v19, %v233_v20 }
  0x4a   : > { %292 = vst [vmem:[#allocation5] sm:$0x1] %v291_v14 }
  0x4b   : > { %v235_v22 = vrot.slane %v234_v21, 1 }
  0x4d   : > { %v236_v23 = vmax.f32 %v234_v21, %v235_v22 }
  0x4f   : > { %v237_v24 = vsub.f32 %v225_v15, %v236_v23  ;;  %v238_v25 = vsub.f32 %v226_v16, %v236_v23  ;;  %v313_v0 = vld [vmem:[#allocation3] sm:$0x1] (!%p534_p7) }
  0x50   : > { %v314_v2 = vsel (!%p534_p7), %vm302_vm1, %v313_v0, 0.0 }
  0x51   : > { %v239_v26 = vmul.f32 1.442695, %v237_v24  ;;  %v241_v27 = vmul.f32 1.442695, %v238_v25  ;;  %v335_v63 = vld [vmem:[#allocation5] sm:$0x1] (!%p534_p7) }
  0x52   : > { %v336_v1 = vsel (!%p534_p7), %vm302_vm1, %v335_v63, 0.0 }
  0x53   : > { %623 = vpow2.f32 %v239_v26 }
  0x54   : > { %625 = vpow2.f32 %v241_v27 }
  0x5d   : > { %v624_v28 = vpop.eup %623 }
  0x5e   : > { %v626_v29 = vpop.eup %625 }
  0x5f   : > { %v243_v30 = vadd.f32 %v626_v29, %v624_v28 }
  0x61   : > { %v244_v31 = vrot.slane %v243_v30, 4 }
  0x63   : > { %v245_v32 = vadd.f32 %v244_v31, %v243_v30 }
  0x65   : > { %v246_v33 = vrot.slane %v245_v32, 2 }
  0x67   : > { %v247_v34 = vadd.f32 %v246_v33, %v245_v32 }
  0x69   : > { %v248_v36 = vrot.slane %v247_v34, 1 }
  0x6b   : > { %v249_v38 = vadd.f32 %v248_v36, %v247_v34 }
  0x6d   : > { %627 = vrcp.f32 %v249_v38 }
  0x77   : > { %v628_v47 = vpop.eup %627 }
  0xbf   : > { %v253_v35 = vpop.permute.xlu0 %252 }
  0xc0   : > { %v260_v39 = vmul.f32 %v624_v28, %v253_v35 }
  0xc3   : > { %v258_v37 = vpop.permute.xlu0 %257 }
  0xc4   : > { %v261_v40 = vmul.f32 %v626_v29, %v258_v37 }
  0xc6   : > { %v262_v41 = vadd.f32 %v261_v40, %v260_v39 }
  0xc8   : > { %v263_v42 = vrot.slane %v262_v41, 4 }
  0xca   : > { %v264_v43 = vadd.f32 %v263_v42, %v262_v41 }
  0xcc   : > { %v265_v44 = vrot.slane %v264_v43, 2 }
  0xce   : > { %v266_v45 = vadd.f32 %v265_v44, %v264_v43 }
  0xd0   : > { %v267_v46 = vrot.slane %v266_v45, 1 }
  0xd2   : > { %v268_v48 = vadd.f32 %v267_v46, %v266_v45 }
  0xd4   : > { %v270_v50 = vmul.f32 %v628_v47, %v268_v48 }
  0xd5   : > { %300 = sbr.rel (%p534_p7) target bundleno = 650 (0x28a), region = 44 }
  0xd6   : > { %v277_v53 = vsel %vm276_vm0, %v270_v50, 0.0 }
  0xd7   : > { %v280_v54 = vadd.f32 %v279_v49, %v277_v53  ;;  %v286_v55 = vmul.f32 %v277_v53, %v277_v53  ;;  %v294_v56 = vmul.f32 %v278_v11, %v277_v53 }
  0xd9   : > { %281 = vst [vmem:[#allocation2] sm:$0x1] %v280_v54  ;;  %v287_v57 = vadd.f32 %v286_v55, %v285_v51  ;;  %v295_v58 = vadd.f32 %v294_v56, %v293_v52 }
  0xdb   : > { %288 = vst [vmem:[#allocation4] sm:$0x1] %v287_v57  ;;  %296 = vst [vmem:[#allocation6] sm:$0x1] %v295_v58 }
  0xe0   : > { %v301_v60 = vld [vmem:[#allocation2] sm:$0x1] }
  0xe1   : > { %v303_v62 = vsel %vm302_vm1, %v301_v60, 0.0 }
  0xe2   : > { %v324_v59 = vld [vmem:[#allocation4] sm:$0x1]  ;;  %304 = vadd.xlane.f32.xlu0 %v303_v62  ;;  %v346_v3 = vld [vmem:[#allocation6] sm:$0x1] }
  0xe3   : > { %v325_v61 = vsel %vm302_vm1, %v324_v59, 0.0  ;;  %v347_v4 = vsel %vm302_vm1, %v346_v3, 0.0 }
  0xe4   : > { %326 = vadd.xlane.f32.xlu1 %v325_v61 }
  0xe6   : > { %315 = vadd.xlane.f32.xlu0 %v314_v2 }
  0xe8   : > { %337 = vadd.xlane.f32.xlu1 %v336_v1 }
  0xea   : > { %348 = vadd.xlane.f32.xlu0 %v347_v4 }
 0x16f   : > { %v305_v6 = vpop.xlane.xlu0 %304 }
 0x170   : > { %v306_v8 = vrot.slane %v305_v6, 4 }
 0x171   : > { %v327_v5 = vpop.xlane.xlu1 %326 }
 0x172   : > { %v328_v7 = vrot.slane %v327_v5, 4  ;;  %v307_v10 = vadd.f32 %v306_v8, %v305_v6 }
 0x173   : > { %v316_v12 = vpop.xlane.xlu0 %315 }
 0x174   : > { %v329_v9 = vadd.f32 %v328_v7, %v327_v5  ;;  %v308_v14 = vrot.slane %v307_v10, 2  ;;  %v317_v16 = vrot.slane %v316_v12, 4 }
 0x175   : > { %v338_v11 = vpop.xlane.xlu1 %337 }
 0x176   : > { %v330_v13 = vrot.slane %v329_v9, 2  ;;  %v339_v15 = vrot.slane %v338_v11, 4  ;;  %v318_v18 = vadd.f32 %v317_v16, %v316_v12  ;;  %v309_v19 = vadd.f32 %v308_v14, %v307_v10 }
 0x177   : > { %v349_v20 = vpop.xlane.xlu0 %348 }
 0x178   : > { %v340_v17 = vadd.f32 %v339_v15, %v338_v11  ;;  %v331_v21 = vadd.f32 %v330_v13, %v329_v9  ;;  %v319_v23 = vrot.slane %v318_v18, 2  ;;  %v350_v24 = vrot.slane %v349_v20, 4 }
 0x179   : > { %v310_v25 = vrot.slane %v309_v19, 1 }
 0x17a   : > { %v341_v22 = vrot.slane %v340_v17, 2  ;;  %v351_v27 = vadd.f32 %v350_v24, %v349_v20  ;;  %v320_v29 = vadd.f32 %v319_v23, %v318_v18  ;;  %v332_v30 = vrot.slane %v331_v21, 1 }
 0x17b   : > { %v311_v28 = vadd.f32 %v310_v25, %v309_v19 }
 0x17c   : > { %v342_v26 = vadd.f32 %v341_v22, %v340_v17  ;;  %v352_v31 = vrot.slane %v351_v27, 2  ;;  %v321_v32 = vrot.slane %v320_v29, 1  ;;  %v333_v37 = vadd.f32 %v332_v30, %v331_v21 }
 0x17d   : > { %541 = vpush %v311_v28 }
 0x17e   : > { %v343_v33 = vrot.slane %v342_v26, 1  ;;  %v353_v34 = vadd.f32 %v352_v31, %v351_v27  ;;  %v322_v35 = vadd.f32 %v321_v32, %v320_v29 }
 0x180   : > { %v344_v36 = vadd.f32 %v343_v33, %v342_v26  ;;  %543 = vpush %v322_v35  ;;  %v354_v38 = vrot.slane %v353_v34, 1 }
 0x181   : > { %545 = vpush %v333_v37 }
 0x182   : > { %547 = vpush %v344_v36  ;;  %v355_v39 = vadd.f32 %v354_v38, %v353_v34 }
 0x184   : > { %549 = vpush %v355_v39 }
 0x1ae   : > { %s542_s14 = spop %541 }
 0x1af   : > { %s359_s15 = smul.f32 0.0033333334, %s542_s14 }
 0x1b1   : > { %s363_s21 = smul.f32 300.0, %s359_s15  ;;  %s544_s22 = spop %543 }
 0x1b2   : > { %s397_s25 = sadd.f32 1e-09, %s359_s15  ;;  %s362_s26 = smul.f32 0.0033333334, %s544_s22 }
 0x1b3   : > { %s546_s27 = spop %545  ;;  %s364_s28 = smul.f32 %s363_s21, %s359_s15 }
 0x1b4   : > { %s367_s29 = smul.f32 300.0, %s362_s26  ;;  %s884_s5 = ssub.f32 %s397_s25, %s362_s26 }
 0x1b5   : > { %s365_s9 = ssub.f32 %s546_s27, %s364_s28  ;;  %s886_s6 = smul.f32 %s363_s21, %s362_s26 }
 0x1b6   : > { %s368_s10 = smul.f32 %s367_s29, %s362_s26  ;;  %s548_s24 = spop %547 }
 0x1b7   : > { %s366_s18 = smax.f32 %s745_s30, %s365_s9  ;;  %s550_s14 = spop %549 }
 0x1b8   : > { %s373_s7 = sadd.f32 3e-16, %s366_s18  ;;  %s400_s12 = smul.f32 0.0033444816, %s366_s18 }
 0x1b9   : > { %s369_s8 = ssub.f32 %s548_s24, %s368_s10 }
 0x1ba   : > { %v374_v40 = vstv %s373_s7  ;;  %v401_v52 = vstv %s400_s12  ;;  %s372_s25 = ssub.f32 %s550_s14, %s886_s6 }
 0x1bb   : > { %629 = vrsqrt.f32 %v374_v40  ;;  %s370_s11 = smax.f32 %s745_s30, %s369_s8  ;;  %vm377_vm2 = vcmp.eq.f32.partialorder %v374_v40, inf  ;;  %v380_v45 = vand.u32 2147483648, %v374_v40  ;;  %vm379_vm3 = vcmp.eq.f32.partialorder %v374_v40, 0.0  ;;  %s430_s8 = smul.f32 %s884_s5, %s884_s5 }
 0x1bc   : > { %v383_v41 = vstv %s370_s11  ;;  %s413_s13 = smul.f32 0.0033444816, %s370_s11  ;;  %vm404_vm6 = vcmp.eq.f32.partialorder %v401_v52, inf  ;;  %v407_v60 = vand.u32 2147483648, %v401_v52  ;;  %vm406_vm8 = vcmp.eq.f32.partialorder %v401_v52, 0.0 }
 0x1bd   : > { %631 = vrsqrt.f32 %v383_v41  ;;  %vm386_vm4 = vcmp.eq.f32.partialorder %v383_v41, inf  ;;  %v389_v49 = vand.u32 2147483648, %v383_v41  ;;  %vm388_vm5 = vcmp.eq.f32.partialorder %v383_v41, 0.0 }
 0x1be   : > { %v414_v53 = vstv %s413_s13  ;;  %633 = vrsqrt.f32 %v401_v52 }
 0x1bf   : > { %635 = vrsqrt.f32 %v414_v53  ;;  %vm417_vm7 = vcmp.eq.f32.partialorder %v414_v53, inf  ;;  %v420_v63 = vand.u32 2147483648, %v414_v53  ;;  %vm419_vm9 = vcmp.eq.f32.partialorder %v414_v53, 0.0 }
 0x1c5   : > { %v630_v42 = vpop.eup %629 }
 0x1c6   : > { %v376_v43 = vmul.f32 %v630_v42, %v374_v40 }
 0x1c7   : > { %v632_v44 = vpop.eup %631 }
 0x1c8   : > { %v378_v46 = vsel %vm377_vm2, %v374_v40, %v376_v43  ;;  %v385_v47 = vmul.f32 %v632_v44, %v383_v41  ;;  %v634_v55 = vpop.eup %633 }
 0x1c9   : > { %v381_v48 = vsel %vm379_vm3, %v380_v45, %v378_v46  ;;  %v636_v56 = vpop.eup %635  ;;  %v403_v57 = vmul.f32 %v634_v55, %v401_v52 }
 0x1ca   : > { %551 = vpush %v381_v48  ;;  %v387_v50 = vsel %vm386_vm4, %v383_v41, %v385_v47  ;;  %v416_v58 = vmul.f32 %v636_v56, %v414_v53 }
 0x1cb   : > { %v390_v51 = vsel %vm388_vm5, %v389_v49, %v387_v50  ;;  %v405_v59 = vsel %vm404_vm6, %v401_v52, %v403_v57 }
 0x1cc   : > { %553 = vpush %v390_v51  ;;  %v418_v61 = vsel %vm417_vm7, %v414_v53, %v416_v58  ;;  %v408_v0 = vsel %vm406_vm8, %v407_v60, %v405_v59 }
 0x1cd   : > { %v421_v1 = vsel %vm419_vm9, %v420_v63, %v418_v61 }
 0x1fb   : > { %s552_s15 = spop %551 }
 0x1fd   : > { %s554_s21 = spop %553 }
 0x1fe   : > { %s392_s22 = smul.f32 %s554_s21, %s552_s15 }
 0x200   : > { %v393_v54 = vstv %s392_s22 }
 0x201   : > { %637 = vrcp.f32 %v393_v54 }
 0x20b   : > { %v638_v62 = vpop.eup %637 }
 0x20c   : > { %555 = vpush %v638_v62 }
 0x20d   : > { %557 = vpush %v408_v0 }
 0x20e   : > { %559 = vpush %v421_v1 }
 0x23d   : > { %s556_s26 = spop %555 }
 0x23e   : > { %s396_s27 = smul.f32 %s556_s26, %s372_s25  ;;  %s558_s28 = spop %557 }
 0x23f   : > { %s410_s29 = sadd.f32 1e-09, %s558_s28  ;;  %s560_s9 = spop %559 }
 0x240   : > { %s423_s10 = smul.f32 2.0, %s396_s27  ;;  %439 = sst [smem:[#allocation11]] %s396_s27 }
 0x241   : > { %s426_s30 = smul.f32 %s410_s29, %s410_s29 }
 0x242   : > { %s424_s18 = smul.f32 %s423_s10, %s410_s29 }
 0x243   : > { %s427_s7 = smul.f32 %s560_s9, %s560_s9 }
 0x244   : > { %s425_s12 = smul.f32 %s560_s9, %s424_s18 }
 0x245   : > { %s428_s24 = sadd.f32 %s427_s7, %s426_s30 }
 0x247   : > { %s431_s11 = sadd.f32 %s430_s8, %s428_s24 }
 0x249   : > { %v432_v2 = vstv %s431_s11 }
 0x24a   : > { %639 = vrcp.f32 %v432_v2 }
 0x254   : > { %v640_v3 = vpop.eup %639 }
 0x255   : > { %561 = vpush %v640_v3 }
 0x286   : > { %s562_s6 = spop %561 }
 0x287   : > { %s435_s13 = smul.f32 %s562_s6, %s425_s12 }
 0x289   : > { %437 = sst [smem:[#allocation10]] %s435_s13 }
 0x28a PF: > { %p578_p4 = scmp.eq.s32.totalorder %s792_s19, 2  ;;  %s671_s21 = scalar_lea.hbm %s948_s3, 16 }
 0x28b   : > { %p672_p5 = scmp.ne.s32.totalorder %s948_s3, %s671_s21  ;;  %p677_p11 = scmp.lt.u32.totalorder %s671_s21, %s948_s3 }
 0x28d   : > { %p673_p6 = pnand %p672_p5, %p578_p4 }
 0x28f   : > { %p674_p9 = pneg %p673_p6 }
 0x291   : > { %p679_p13 = pnand %p677_p11, %p674_p9 }
 0x293   : > { %682 = shalt.err (!%p679_p13)
}
 0x294   : > { %s746_s27 = smov [#allocation10]   ;;  %s683_s30 = scalar_lea.hbm %s949_s4, 16 }
 0x295   : > { %566 = dma.smem_to_hbm (%p578_p4), %s746_s27, 16, %s948_s3, [#allocation9]  }
 0x296   : > { %p684_p0 = scmp.ne.s32.totalorder %s949_s4, %s683_s30  ;;  %p689_p12 = scmp.lt.u32.totalorder %s683_s30, %s949_s4 }
 0x298   : > { %p685_p1 = pnand %p684_p0, %p578_p4 }
 0x29a   : > { %p686_p10 = pneg %p685_p1 }
 0x29c   : > { %p691_p2 = pnand %p689_p12, %p686_p10 }
 0x29e   : > { %694 = shalt.err (!%p691_p2)
}
 0x29f   : > { %s747_s11 = smov [#allocation11]  }
 0x2a0   : > { %568 = dma.smem_to_hbm (%p578_p4), %s747_s11, 16, %s949_s4, [#allocation12]  }
 0x2a1   : > { %716 = dma.done.wait (%p578_p4), [#allocation9], 16  }
 0x2a2   : > { %718 = vsyncadd (%p578_p4), [#allocation9], 4294967280 }
 0x2a3   : > { %720 = dma.done.wait (%p578_p4), [#allocation12], 16  }
 0x2a4   : > { %722 = vsyncadd (%p578_p4), [#allocation12], 4294967280 }
 0x2a5   : > { %466 = sfence }
 0x2a6 PF: > { %p17_p8 = scmp.ge.s32.totalorder %s795_s20, 5   ;;  %s952_s15 = smov %s729_s16 }
 0x2a7   : > { %s953_s16 = smov %s733_s17  ;;  %s954_s17 = smov %s805_s23 }
 0x2a8   : > { %s955_s18 = smov %s795_s20  ;;  %19 = sbr.rel (!%p17_p8) target bundleno = 5 (0x5), region = 90 }
 0x2af   :  { %472 = vsyncpa [#allocation8], 1 }
 0x2b0   :  { %474 = vsyncpa [#allocation8 + $0x1], 1 }
 0x2b1   :  { %475 = vsyncpa [#allocation9], 1 }
 0x2b2   :  { %477 = vsyncpa [#allocation9 + $0x1], 1 }
 0x2b3   :  { %478 = vsyncpa [#allocation12], 1 }

</bundles_post_ra>
